<compile_context>
chip_gen: v7x
topology: tpu7x:2x2x1
jax: 0.10.0
libtpu: 0.0.40
codegen_flags: <defaults>
</compile_context>

<pallas_src>
import functools

import jax
import jax.numpy as jnp
from jax.experimental import pallas as pl
from jax.experimental.pallas import tpu as pltpu

LN_EPS = 1e-5


def attention_fusion_kernel(x_ref, gamma_ref, beta_ref,
                            wqkv_t_ref, b_qkv_ref,
                            wo_t_ref, bo_ref,
                            out_ref, *, num_heads, use_bf16_matmul):
    bb, S, E = x_ref.shape
    H = num_heads
    Dh = E // H

    def mm(a, b):
        if use_bf16_matmul:
            a = a.astype(jnp.bfloat16)
            b = b.astype(jnp.bfloat16)
        return jnp.dot(a, b, preferred_element_type=jnp.float32)

    def bmm(spec, a, b):
        if use_bf16_matmul:
            a = a.astype(jnp.bfloat16)
            b = b.astype(jnp.bfloat16)
        return jnp.einsum(spec, a, b, preferred_element_type=jnp.float32)

    # ---- LayerNorm over the embedding dim, all bb*S rows at once (f32 VPU/EUP) ----
    x = x_ref[...].reshape(bb * S, E)
    mean = jnp.mean(x, axis=-1, keepdims=True)
    var = jnp.mean(jnp.square(x - mean), axis=-1, keepdims=True)
    xn = (x - mean) * jax.lax.rsqrt(var + LN_EPS)
    xn = xn * gamma_ref[...] + beta_ref[...]

    # ---- Fused QKV projection: ONE (bb*S, E) @ (E, 3E) matmul (weights pre-transposed) ----
    qkv = mm(xn, wqkv_t_ref[...]) + b_qkv_ref[...]

    scale = 1.0 / jnp.sqrt(jnp.float32(Dh))
    q3 = (qkv[:, :E] * scale).reshape(bb, S, E)      # 1/sqrt(Dh) folded into q once
    k3 = qkv[:, E:2 * E].reshape(bb, S, E)
    v3 = qkv[:, 2 * E:].reshape(bb, S, E)

    # ---- Attention, batched over the bb batches; short static unroll over H=4 heads.
    # mean over query rows commutes with P@V and with the out projection -> folded (exact).
    ctx_heads = []
    for h in range(H):
        c0 = h * Dh
        qh = q3[:, :, c0:c0 + Dh]                                    # (bb, S, Dh)
        kh = k3[:, :, c0:c0 + Dh]
        vh = v3[:, :, c0:c0 + Dh]
        s = bmm("bqd,bkd->bqk", qh, kh)                              # (bb, S, S)
        s = s - jnp.max(s, axis=-1, keepdims=True)
        p = jnp.exp(s)
        inv = pl.reciprocal(jnp.sum(p, axis=-1, keepdims=True), approx=False)
        p_mean = jnp.mean(p * inv, axis=1, keepdims=True)            # (bb, 1, S)
        ctx_heads.append(bmm("bqs,bsd->bqd", p_mean, vh))            # (bb, 1, Dh)

    ctx = jnp.concatenate(ctx_heads, axis=-1).reshape(bb, E)         # (bb, E)

    # ---- Single fused output projection + bias, one dense store ----
    out_ref[...] = mm(ctx, wo_t_ref[...]) + bo_ref[...]


def _tensorcores_per_chip():
    """Best-effort count of TensorCores behind one JAX device (v5e/v6e: 1, v7x/v4: 2)."""
    try:
        kind = jax.devices()[0].device_kind.lower()
    except Exception:
        return 1
    if "7" in kind or "v4" in kind:
        return 2
    return 1


def _vmem_bytes_estimate(bb, S, E):
    rows = bb * S
    x_blk = 2 * rows * E * 4                       # double-buffered input block
    inter = 5 * rows * E * 4                       # xn + qkv(3E) + slack
    scores = 3 * bb * S * S * 4                    # per-head s / p temporaries
    weights = (E * 3 * E + E * E + 8 * E) * 4
    out_blk = 2 * bb * E * 4
    return x_blk + inter + scores + weights + out_blk


def attention_fusion(x, params, *, num_heads=4, num_batch_blocks=None,
                     use_bf16_matmul=False):
    """x: (B, S, E) float32. Returns (B, E) float32, matching AttentionFusion.forward."""
    B, S, E = x.shape
    gamma, beta, w_qkv_t, b_qkv, wo_t, bo = params
    assert E % num_heads == 0

    vmem_budget = 16 * 1024 * 1024   # conservative; fits every chip's scoped VMEM

    if num_batch_blocks is None:
        # Device-aware split: only use >1 grid step when there are 2 TensorCores behind
        # this device AND per-step work (rows) clearly exceeds the ~0.35us step overhead.
        num_batch_blocks = 1
        if _tensorcores_per_chip() > 1 and B % 2 == 0 and (B // 2) * S >= 64:
            num_batch_blocks = 2
        # VMEM guard: grow the split (to the next divisor of B) until the per-step
        # footprint fits the budget.
        while (num_batch_blocks < B
               and _vmem_bytes_estimate(B // num_batch_blocks, S, E) > vmem_budget):
            nxt = num_batch_blocks + 1
            while B % nxt != 0:
                nxt += 1
            num_batch_blocks = nxt
    assert B % num_batch_blocks == 0
    bb = B // num_batch_blocks

    const2d = lambda i: (0, 0)
    in_specs = [
        pl.BlockSpec((bb, S, E), lambda i: (i, 0, 0)),   # x block of bb batches
        pl.BlockSpec((1, E), const2d),                   # gamma
        pl.BlockSpec((1, E), const2d),                   # beta
        pl.BlockSpec((E, 3 * E), const2d),               # fused W_qkv^T (grid-invariant)
        pl.BlockSpec((1, 3 * E), const2d),               # fused b_qkv
        pl.BlockSpec((E, E), const2d),                   # Wo^T
        pl.BlockSpec((1, E), const2d),                   # bo
    ]
    out_specs = pl.BlockSpec((bb, E), lambda i: (i, 0))

    kernel = functools.partial(attention_fusion_kernel,
                               num_heads=num_heads,
                               use_bf16_matmul=use_bf16_matmul)
    return pl.pallas_call(
        kernel,
        out_shape=jax.ShapeDtypeStruct((B, E), jnp.float32),
        grid_spec=pltpu.PrefetchScalarGridSpec(
            num_scalar_prefetch=0,
            grid=(num_batch_blocks,),
            in_specs=in_specs,
            out_specs=out_specs,
        ),
        compiler_params=pltpu.CompilerParams(
            dimension_semantics=("parallel",),
            vmem_limit_bytes=32 * 1024 * 1024),
    )(x, gamma, beta, w_qkv_t, b_qkv, wo_t, bo)


def init_params(key, embed_dim):
    """Synthetic params mirroring nn.MultiheadAttention + nn.LayerNorm, pre-fused and
    pre-transposed once on the host so the kernel never transposes or splits weights."""
    E = embed_dim
    k_in, k_out = jax.random.split(key, 2)
    in_proj_w = jax.random.normal(k_in, (3 * E, E), jnp.float32) * 0.05   # [Wq; Wk; Wv]
    in_proj_b = jnp.zeros((3 * E,), jnp.float32)
    wo = jax.random.normal(k_out, (E, E), jnp.float32) * 0.05
    bo = jnp.zeros((E,), jnp.float32)
    gamma = jnp.ones((E,), jnp.float32)
    beta = jnp.zeros((E,), jnp.float32)

    w_qkv_t = in_proj_w.T                    # (E, 3E) == [Wq^T | Wk^T | Wv^T]
    b_qkv = in_proj_b.reshape(1, 3 * E)
    wo_t = wo.T
    r = lambda a: a.reshape(1, E)
    return (r(gamma), r(beta), w_qkv_t, b_qkv, wo_t, r(bo))


def attention_fusion_ref(x, params, *, num_heads=4):
    """Pure-JAX reference (matches the PyTorch module's forward)."""
    gamma, beta, w_qkv_t, b_qkv, wo_t, bo = params
    B, S, E = x.shape
    Dh = E // num_heads
    mean = jnp.mean(x, axis=-1, keepdims=True)
    var = jnp.mean(jnp.square(x - mean), axis=-1, keepdims=True)
    xn = (x - mean) / jnp.sqrt(var + LN_EPS) * gamma[0] + beta[0]
    qkv = xn @ w_qkv_t + b_qkv[0]
    q, k, v = qkv[..., :E], qkv[..., E:2 * E], qkv[..., 2 * E:]
    rs = lambda a: a.reshape(B, S, num_heads, Dh).transpose(0, 2, 1, 3)
    q, k, v = rs(q), rs(k), rs(v)
    s = jnp.einsum("bhqd,bhkd->bhqk", q, k) / jnp.sqrt(jnp.float32(Dh))
    p = jax.nn.softmax(s, axis=-1)
    ctx = jnp.einsum("bhqk,bhkd->bhqd", p, v)
    ctx = ctx.transpose(0, 2, 1, 3).reshape(B, S, E)
    out = ctx @ wo_t + bo[0]
    return out.mean(axis=1)


if __name__ == "__main__":
    B, S, E = 2, 8, 32          # batch, seq (num_modalities tokens), embed_dim
    NUM_HEADS = 4

    key = jax.random.PRNGKey(0)
    kx, kp = jax.random.split(key)
    x = jax.random.normal(kx, (B, S, E), jnp.float32)
    params = init_params(kp, E)

    out = attention_fusion(x, params, num_heads=NUM_HEADS)
    out = jax.block_until_ready(out)
    assert out.shape == (B, E), out.shape

    ref = attention_fusion_ref(x, params, num_heads=NUM_HEADS)
    err = float(jnp.max(jnp.abs(out - ref)))
    assert err < 1e-2, f"max abs err {err}"
    print("KERNEL_OK")
</pallas_src>

<mosaic_0001>
module attributes {stable_mosaic.version = 11 : i64} {
  func.func @attention_fusion_kernel(%arg0: i32, %arg1: memref<2x8x32xf32, #tpu.memory_space<vmem>>, %arg2: memref<1x32xf32, #tpu.memory_space<vmem>>, %arg3: memref<1x32xf32, #tpu.memory_space<vmem>>, %arg4: memref<32x96xf32, #tpu.memory_space<vmem>>, %arg5: memref<1x96xf32, #tpu.memory_space<vmem>>, %arg6: memref<32x32xf32, #tpu.memory_space<vmem>>, %arg7: memref<1x32xf32, #tpu.memory_space<vmem>>, %arg8: memref<2x32xf32, #tpu.memory_space<vmem>>) attributes {dimension_semantics = [#tpu.dimension_semantics<parallel>], iteration_bounds = array<i64: 1>, scalar_prefetch = 0 : i64, scratch_operands = 0 : i64, tpu.core_type = #tpu.core_type<tc>, window_params = [{transform_indices = @transform_0, window_bounds = array<i64: 2, 8, 32>}, {pipeline_mode = #tpu.pipeline_mode<synchronous>, transform_indices = @transform_1, window_bounds = array<i64: 1, 32>}, {pipeline_mode = #tpu.pipeline_mode<synchronous>, transform_indices = @transform_2, window_bounds = array<i64: 1, 32>}, {pipeline_mode = #tpu.pipeline_mode<synchronous>, transform_indices = @transform_3, window_bounds = array<i64: 32, 96>}, {pipeline_mode = #tpu.pipeline_mode<synchronous>, transform_indices = @transform_4, window_bounds = array<i64: 1, 96>}, {pipeline_mode = #tpu.pipeline_mode<synchronous>, transform_indices = @transform_5, window_bounds = array<i64: 32, 32>}, {pipeline_mode = #tpu.pipeline_mode<synchronous>, transform_indices = @transform_6, window_bounds = array<i64: 1, 32>}, {transform_indices = @transform_7, window_bounds = array<i64: 2, 32>}]} {
    %c0 = arith.constant 0 : index
    %c0_0 = arith.constant 0 : index
    %c0_1 = arith.constant 0 : index
    %0 = vector.load %arg1[%c0, %c0_0, %c0_1] : memref<2x8x32xf32, #tpu.memory_space<vmem>>, vector<2x8x32xf32>
    %1 = vector.shape_cast %0 : vector<2x8x32xf32> to vector<16x32xf32>
    %cst = arith.constant dense<0.000000e+00> : vector<16xf32>
    %2 = vector.multi_reduction <add>, %1, %cst [1] : vector<16x32xf32> to vector<16xf32>
    %3 = vector.shape_cast %2 : vector<16xf32> to vector<16x1xf32>
    %cst_2 = arith.constant 3.200000e+01 : f32
    %4 = vector.broadcast %cst_2 : f32 to vector<16x1xf32>
    %5 = arith.divf %3, %4 : vector<16x1xf32>
    %6 = vector.broadcast %5 : vector<16x1xf32> to vector<16x32xf32>
    %7 = arith.subf %1, %6 : vector<16x32xf32>
    %8 = arith.mulf %7, %7 : vector<16x32xf32>
    %cst_3 = arith.constant dense<0.000000e+00> : vector<16xf32>
    %9 = vector.multi_reduction <add>, %8, %cst_3 [1] : vector<16x32xf32> to vector<16xf32>
    %10 = vector.shape_cast %9 : vector<16xf32> to vector<16x1xf32>
    %cst_4 = arith.constant 3.200000e+01 : f32
    %11 = vector.broadcast %cst_4 : f32 to vector<16x1xf32>
    %12 = arith.divf %10, %11 : vector<16x1xf32>
    %13 = vector.broadcast %5 : vector<16x1xf32> to vector<16x32xf32>
    %14 = arith.subf %1, %13 : vector<16x32xf32>
    %cst_5 = arith.constant 9.99999974E-6 : f32
    %15 = vector.broadcast %cst_5 : f32 to vector<16x1xf32>
    %16 = arith.addf %12, %15 : vector<16x1xf32>
    %17 = math.rsqrt %16 : vector<16x1xf32>
    %18 = vector.broadcast %17 : vector<16x1xf32> to vector<16x32xf32>
    %19 = arith.mulf %14, %18 : vector<16x32xf32>
    %c0_6 = arith.constant 0 : index
    %c0_7 = arith.constant 0 : index
    %20 = vector.load %arg2[%c0_6, %c0_7] : memref<1x32xf32, #tpu.memory_space<vmem>>, vector<1x32xf32>
    %21 = vector.broadcast %20 : vector<1x32xf32> to vector<16x32xf32>
    %22 = arith.mulf %19, %21 : vector<16x32xf32>
    %c0_8 = arith.constant 0 : index
    %c0_9 = arith.constant 0 : index
    %23 = vector.load %arg3[%c0_8, %c0_9] : memref<1x32xf32, #tpu.memory_space<vmem>>, vector<1x32xf32>
    %24 = vector.broadcast %23 : vector<1x32xf32> to vector<16x32xf32>
    %25 = arith.addf %22, %24 : vector<16x32xf32>
    %c0_10 = arith.constant 0 : index
    %c0_11 = arith.constant 0 : index
    %26 = vector.load %arg4[%c0_10, %c0_11] : memref<32x96xf32, #tpu.memory_space<vmem>>, vector<32x96xf32>
    %cst_12 = arith.constant dense<0.000000e+00> : vector<16x96xf32>
    %27 = tpu.matmul %25, %26, %cst_12 {dimension_numbers = #tpu.dot_dimension_numbers<[1], [0], [0], [1], [0, 0, 1, 1], [], []>} : vector<16x32xf32>, vector<32x96xf32>, vector<16x96xf32> -> vector<16x96xf32>
    %c0_13 = arith.constant 0 : index
    %c0_14 = arith.constant 0 : index
    %28 = vector.load %arg5[%c0_13, %c0_14] : memref<1x96xf32, #tpu.memory_space<vmem>>, vector<1x96xf32>
    %29 = vector.broadcast %28 : vector<1x96xf32> to vector<16x96xf32>
    %30 = arith.addf %27, %29 : vector<16x96xf32>
    %cst_15 = arith.constant 8.000000e+00 : f32
    %31 = math.sqrt %cst_15 : f32
    %cst_16 = arith.constant 1.000000e+00 : f32
    %32 = arith.divf %cst_16, %31 : f32
    %33 = vector.extract_strided_slice %30 {offsets = [0, 0], sizes = [16, 32], strides = [1, 1]} : vector<16x96xf32> to vector<16x32xf32>
    %34 = vector.broadcast %32 : f32 to vector<16x32xf32>
    %35 = arith.mulf %33, %34 : vector<16x32xf32>
    %36 = vector.shape_cast %35 : vector<16x32xf32> to vector<2x8x32xf32>
    %37 = vector.extract_strided_slice %30 {offsets = [0, 32], sizes = [16, 32], strides = [1, 1]} : vector<16x96xf32> to vector<16x32xf32>
    %38 = vector.shape_cast %37 : vector<16x32xf32> to vector<2x8x32xf32>
    %39 = vector.extract_strided_slice %30 {offsets = [0, 64], sizes = [16, 32], strides = [1, 1]} : vector<16x96xf32> to vector<16x32xf32>
    %40 = vector.shape_cast %39 : vector<16x32xf32> to vector<2x8x32xf32>
    %41 = vector.extract_strided_slice %36 {offsets = [0, 0, 0], sizes = [2, 8, 8], strides = [1, 1, 1]} : vector<2x8x32xf32> to vector<2x8x8xf32>
    %42 = vector.extract_strided_slice %38 {offsets = [0, 0, 0], sizes = [2, 8, 8], strides = [1, 1, 1]} : vector<2x8x32xf32> to vector<2x8x8xf32>
    %43 = vector.extract_strided_slice %40 {offsets = [0, 0, 0], sizes = [2, 8, 8], strides = [1, 1, 1]} : vector<2x8x32xf32> to vector<2x8x8xf32>
    "tpu.trace_start"() <{level = 10 : i32, message = "bqd,bkd->bqk"}> : () -> ()
    %cst_17 = arith.constant dense<0.000000e+00> : vector<2x8x8xf32>
    %44 = tpu.matmul %41, %42, %cst_17 {dimension_numbers = #tpu.dot_dimension_numbers<[2], [2], [1], [1], [0, 0, 0, 1, 1, 1], [0], [0]>} : vector<2x8x8xf32>, vector<2x8x8xf32>, vector<2x8x8xf32> -> vector<2x8x8xf32>
    "tpu.trace_stop"() : () -> ()
    %cst_18 = arith.constant dense<0xFF800000> : vector<2x8xf32>
    %45 = vector.multi_reduction <maximumf>, %44, %cst_18 [2] : vector<2x8x8xf32> to vector<2x8xf32>
    %46 = vector.shape_cast %45 : vector<2x8xf32> to vector<2x8x1xf32>
    %47 = vector.broadcast %46 : vector<2x8x1xf32> to vector<2x8x8xf32>
    %48 = arith.subf %44, %47 : vector<2x8x8xf32>
    %49 = math.exp %48 : vector<2x8x8xf32>
    %cst_19 = arith.constant dense<0.000000e+00> : vector<2x8xf32>
    %50 = vector.multi_reduction <add>, %49, %cst_19 [2] : vector<2x8x8xf32> to vector<2x8xf32>
    %51 = vector.shape_cast %50 : vector<2x8xf32> to vector<2x8x1xf32>
    %52 = tpu.reciprocal %51 : vector<2x8x1xf32> -> vector<2x8x1xf32>
    %53 = vector.broadcast %52 : vector<2x8x1xf32> to vector<2x8x8xf32>
    %54 = arith.mulf %49, %53 : vector<2x8x8xf32>
    %cst_20 = arith.constant dense<0.000000e+00> : vector<2x8xf32>
    %55 = vector.multi_reduction <add>, %54, %cst_20 [1] : vector<2x8x8xf32> to vector<2x8xf32>
    %56 = vector.shape_cast %55 : vector<2x8xf32> to vector<2x1x8xf32>
    %cst_21 = arith.constant 8.000000e+00 : f32
    %57 = vector.broadcast %cst_21 : f32 to vector<2x1x8xf32>
    %58 = arith.divf %56, %57 : vector<2x1x8xf32>
    "tpu.trace_start"() <{level = 10 : i32, message = "bqs,bsd->bqd"}> : () -> ()
    %cst_22 = arith.constant dense<0.000000e+00> : vector<2x1x8xf32>
    %59 = tpu.matmul %58, %43, %cst_22 {dimension_numbers = #tpu.dot_dimension_numbers<[2], [1], [1], [2], [0, 0, 0, 1, 1, 2], [0], [0]>} : vector<2x1x8xf32>, vector<2x8x8xf32>, vector<2x1x8xf32> -> vector<2x1x8xf32>
    "tpu.trace_stop"() : () -> ()
    %60 = vector.extract_strided_slice %36 {offsets = [0, 0, 8], sizes = [2, 8, 8], strides = [1, 1, 1]} : vector<2x8x32xf32> to vector<2x8x8xf32>
    %61 = vector.extract_strided_slice %38 {offsets = [0, 0, 8], sizes = [2, 8, 8], strides = [1, 1, 1]} : vector<2x8x32xf32> to vector<2x8x8xf32>
    %62 = vector.extract_strided_slice %40 {offsets = [0, 0, 8], sizes = [2, 8, 8], strides = [1, 1, 1]} : vector<2x8x32xf32> to vector<2x8x8xf32>
    "tpu.trace_start"() <{level = 10 : i32, message = "bqd,bkd->bqk"}> : () -> ()
    %cst_23 = arith.constant dense<0.000000e+00> : vector<2x8x8xf32>
    %63 = tpu.matmul %60, %61, %cst_23 {dimension_numbers = #tpu.dot_dimension_numbers<[2], [2], [1], [1], [0, 0, 0, 1, 1, 1], [0], [0]>} : vector<2x8x8xf32>, vector<2x8x8xf32>, vector<2x8x8xf32> -> vector<2x8x8xf32>
    "tpu.trace_stop"() : () -> ()
    %cst_24 = arith.constant dense<0xFF800000> : vector<2x8xf32>
    %64 = vector.multi_reduction <maximumf>, %63, %cst_24 [2] : vector<2x8x8xf32> to vector<2x8xf32>
    %65 = vector.shape_cast %64 : vector<2x8xf32> to vector<2x8x1xf32>
    %66 = vector.broadcast %65 : vector<2x8x1xf32> to vector<2x8x8xf32>
    %67 = arith.subf %63, %66 : vector<2x8x8xf32>
    %68 = math.exp %67 : vector<2x8x8xf32>
    %cst_25 = arith.constant dense<0.000000e+00> : vector<2x8xf32>
    %69 = vector.multi_reduction <add>, %68, %cst_25 [2] : vector<2x8x8xf32> to vector<2x8xf32>
    %70 = vector.shape_cast %69 : vector<2x8xf32> to vector<2x8x1xf32>
    %71 = tpu.reciprocal %70 : vector<2x8x1xf32> -> vector<2x8x1xf32>
    %72 = vector.broadcast %71 : vector<2x8x1xf32> to vector<2x8x8xf32>
    %73 = arith.mulf %68, %72 : vector<2x8x8xf32>
    %cst_26 = arith.constant dense<0.000000e+00> : vector<2x8xf32>
    %74 = vector.multi_reduction <add>, %73, %cst_26 [1] : vector<2x8x8xf32> to vector<2x8xf32>
    %75 = vector.shape_cast %74 : vector<2x8xf32> to vector<2x1x8xf32>
    %cst_27 = arith.constant 8.000000e+00 : f32
    %76 = vector.broadcast %cst_27 : f32 to vector<2x1x8xf32>
    %77 = arith.divf %75, %76 : vector<2x1x8xf32>
    "tpu.trace_start"() <{level = 10 : i32, message = "bqs,bsd->bqd"}> : () -> ()
    %cst_28 = arith.constant dense<0.000000e+00> : vector<2x1x8xf32>
    %78 = tpu.matmul %77, %62, %cst_28 {dimension_numbers = #tpu.dot_dimension_numbers<[2], [1], [1], [2], [0, 0, 0, 1, 1, 2], [0], [0]>} : vector<2x1x8xf32>, vector<2x8x8xf32>, vector<2x1x8xf32> -> vector<2x1x8xf32>
    "tpu.trace_stop"() : () -> ()
    %79 = vector.extract_strided_slice %36 {offsets = [0, 0, 16], sizes = [2, 8, 8], strides = [1, 1, 1]} : vector<2x8x32xf32> to vector<2x8x8xf32>
    %80 = vector.extract_strided_slice %38 {offsets = [0, 0, 16], sizes = [2, 8, 8], strides = [1, 1, 1]} : vector<2x8x32xf32> to vector<2x8x8xf32>
    %81 = vector.extract_strided_slice %40 {offsets = [0, 0, 16], sizes = [2, 8, 8], strides = [1, 1, 1]} : vector<2x8x32xf32> to vector<2x8x8xf32>
    "tpu.trace_start"() <{level = 10 : i32, message = "bqd,bkd->bqk"}> : () -> ()
    %cst_29 = arith.constant dense<0.000000e+00> : vector<2x8x8xf32>
    %82 = tpu.matmul %79, %80, %cst_29 {dimension_numbers = #tpu.dot_dimension_numbers<[2], [2], [1], [1], [0, 0, 0, 1, 1, 1], [0], [0]>} : vector<2x8x8xf32>, vector<2x8x8xf32>, vector<2x8x8xf32> -> vector<2x8x8xf32>
    "tpu.trace_stop"() : () -> ()
    %cst_30 = arith.constant dense<0xFF800000> : vector<2x8xf32>
    %83 = vector.multi_reduction <maximumf>, %82, %cst_30 [2] : vector<2x8x8xf32> to vector<2x8xf32>
    %84 = vector.shape_cast %83 : vector<2x8xf32> to vector<2x8x1xf32>
    %85 = vector.broadcast %84 : vector<2x8x1xf32> to vector<2x8x8xf32>
    %86 = arith.subf %82, %85 : vector<2x8x8xf32>
    %87 = math.exp %86 : vector<2x8x8xf32>
    %cst_31 = arith.constant dense<0.000000e+00> : vector<2x8xf32>
    %88 = vector.multi_reduction <add>, %87, %cst_31 [2] : vector<2x8x8xf32> to vector<2x8xf32>
    %89 = vector.shape_cast %88 : vector<2x8xf32> to vector<2x8x1xf32>
    %90 = tpu.reciprocal %89 : vector<2x8x1xf32> -> vector<2x8x1xf32>
    %91 = vector.broadcast %90 : vector<2x8x1xf32> to vector<2x8x8xf32>
    %92 = arith.mulf %87, %91 : vector<2x8x8xf32>
    %cst_32 = arith.constant dense<0.000000e+00> : vector<2x8xf32>
    %93 = vector.multi_reduction <add>, %92, %cst_32 [1] : vector<2x8x8xf32> to vector<2x8xf32>
    %94 = vector.shape_cast %93 : vector<2x8xf32> to vector<2x1x8xf32>
    %cst_33 = arith.constant 8.000000e+00 : f32
    %95 = vector.broadcast %cst_33 : f32 to vector<2x1x8xf32>
    %96 = arith.divf %94, %95 : vector<2x1x8xf32>
    "tpu.trace_start"() <{level = 10 : i32, message = "bqs,bsd->bqd"}> : () -> ()
    %cst_34 = arith.constant dense<0.000000e+00> : vector<2x1x8xf32>
    %97 = tpu.matmul %96, %81, %cst_34 {dimension_numbers = #tpu.dot_dimension_numbers<[2], [1], [1], [2], [0, 0, 0, 1, 1, 2], [0], [0]>} : vector<2x1x8xf32>, vector<2x8x8xf32>, vector<2x1x8xf32> -> vector<2x1x8xf32>
    "tpu.trace_stop"() : () -> ()
    %98 = vector.extract_strided_slice %36 {offsets = [0, 0, 24], sizes = [2, 8, 8], strides = [1, 1, 1]} : vector<2x8x32xf32> to vector<2x8x8xf32>
    %99 = vector.extract_strided_slice %38 {offsets = [0, 0, 24], sizes = [2, 8, 8], strides = [1, 1, 1]} : vector<2x8x32xf32> to vector<2x8x8xf32>
    %100 = vector.extract_strided_slice %40 {offsets = [0, 0, 24], sizes = [2, 8, 8], strides = [1, 1, 1]} : vector<2x8x32xf32> to vector<2x8x8xf32>
    "tpu.trace_start"() <{level = 10 : i32, message = "bqd,bkd->bqk"}> : () -> ()
    %cst_35 = arith.constant dense<0.000000e+00> : vector<2x8x8xf32>
    %101 = tpu.matmul %98, %99, %cst_35 {dimension_numbers = #tpu.dot_dimension_numbers<[2], [2], [1], [1], [0, 0, 0, 1, 1, 1], [0], [0]>} : vector<2x8x8xf32>, vector<2x8x8xf32>, vector<2x8x8xf32> -> vector<2x8x8xf32>
    "tpu.trace_stop"() : () -> ()
    %cst_36 = arith.constant dense<0xFF800000> : vector<2x8xf32>
    %102 = vector.multi_reduction <maximumf>, %101, %cst_36 [2] : vector<2x8x8xf32> to vector<2x8xf32>
    %103 = vector.shape_cast %102 : vector<2x8xf32> to vector<2x8x1xf32>
    %104 = vector.broadcast %103 : vector<2x8x1xf32> to vector<2x8x8xf32>
    %105 = arith.subf %101, %104 : vector<2x8x8xf32>
    %106 = math.exp %105 : vector<2x8x8xf32>
    %cst_37 = arith.constant dense<0.000000e+00> : vector<2x8xf32>
    %107 = vector.multi_reduction <add>, %106, %cst_37 [2] : vector<2x8x8xf32> to vector<2x8xf32>
    %108 = vector.shape_cast %107 : vector<2x8xf32> to vector<2x8x1xf32>
    %109 = tpu.reciprocal %108 : vector<2x8x1xf32> -> vector<2x8x1xf32>
    %110 = vector.broadcast %109 : vector<2x8x1xf32> to vector<2x8x8xf32>
    %111 = arith.mulf %106, %110 : vector<2x8x8xf32>
    %cst_38 = arith.constant dense<0.000000e+00> : vector<2x8xf32>
    %112 = vector.multi_reduction <add>, %111, %cst_38 [1] : vector<2x8x8xf32> to vector<2x8xf32>
    %113 = vector.shape_cast %112 : vector<2x8xf32> to vector<2x1x8xf32>
    %cst_39 = arith.constant 8.000000e+00 : f32
    %114 = vector.broadcast %cst_39 : f32 to vector<2x1x8xf32>
    %115 = arith.divf %113, %114 : vector<2x1x8xf32>
    "tpu.trace_start"() <{level = 10 : i32, message = "bqs,bsd->bqd"}> : () -> ()
    %cst_40 = arith.constant dense<0.000000e+00> : vector<2x1x8xf32>
    %116 = tpu.matmul %115, %100, %cst_40 {dimension_numbers = #tpu.dot_dimension_numbers<[2], [1], [1], [2], [0, 0, 0, 1, 1, 2], [0], [0]>} : vector<2x1x8xf32>, vector<2x8x8xf32>, vector<2x1x8xf32> -> vector<2x1x8xf32>
    "tpu.trace_stop"() : () -> ()
    %117 = tpu.concatenate %59, %78, %97, %116 in 2 : vector<2x1x8xf32>, vector<2x1x8xf32>, vector<2x1x8xf32>, vector<2x1x8xf32> -> vector<2x1x32xf32>
    %118 = vector.shape_cast %117 : vector<2x1x32xf32> to vector<2x32xf32>
    %c0_41 = arith.constant 0 : index
    %c0_42 = arith.constant 0 : index
    %119 = vector.load %arg6[%c0_41, %c0_42] : memref<32x32xf32, #tpu.memory_space<vmem>>, vector<32x32xf32>
    %cst_43 = arith.constant dense<0.000000e+00> : vector<2x32xf32>
    %120 = tpu.matmul %118, %119, %cst_43 {dimension_numbers = #tpu.dot_dimension_numbers<[1], [0], [0], [1], [0, 0, 1, 1], [], []>} : vector<2x32xf32>, vector<32x32xf32>, vector<2x32xf32> -> vector<2x32xf32>
    %c0_44 = arith.constant 0 : index
    %c0_45 = arith.constant 0 : index
    %121 = vector.load %arg7[%c0_44, %c0_45] : memref<1x32xf32, #tpu.memory_space<vmem>>, vector<1x32xf32>
    %122 = vector.broadcast %121 : vector<1x32xf32> to vector<2x32xf32>
    %123 = arith.addf %120, %122 : vector<2x32xf32>
    %c0_46 = arith.constant 0 : index
    %c0_47 = arith.constant 0 : index
    %124 = vector.load %arg8[%c0_46, %c0_47] : memref<2x32xf32, #tpu.memory_space<vmem>>, vector<2x32xf32>
    tpu.vector_store %arg8[%c0_46, %c0_47], %123 {strides = array<i32>} : memref<2x32xf32, #tpu.memory_space<vmem>>, vector<2x32xf32>,
    return
  }
  func.func @transform_0(%arg0: i32) -> (i32, i32, i32) {
    %c0_i32 = arith.constant 0 : i32
    %c0_i32_0 = arith.constant 0 : i32
    %c0_i32_1 = arith.constant 0 : i32
    return %arg0, %c0_i32, %c0_i32_0 : i32, i32, i32
  }
  func.func @transform_1(%arg0: i32) -> (i32, i32) {
    %c0_i32 = arith.constant 0 : i32
    %c0_i32_0 = arith.constant 0 : i32
    %c0_i32_1 = arith.constant 0 : i32
    return %c0_i32, %c0_i32_0 : i32, i32
  }
  func.func @transform_2(%arg0: i32) -> (i32, i32) {
    %c0_i32 = arith.constant 0 : i32
    %c0_i32_0 = arith.constant 0 : i32
    %c0_i32_1 = arith.constant 0 : i32
    return %c0_i32, %c0_i32_0 : i32, i32
  }
  func.func @transform_3(%arg0: i32) -> (i32, i32) {
    %c0_i32 = arith.constant 0 : i32
    %c0_i32_0 = arith.constant 0 : i32
    %c0_i32_1 = arith.constant 0 : i32
    return %c0_i32, %c0_i32_0 : i32, i32
  }
  func.func @transform_4(%arg0: i32) -> (i32, i32) {
    %c0_i32 = arith.constant 0 : i32
    %c0_i32_0 = arith.constant 0 : i32
    %c0_i32_1 = arith.constant 0 : i32
    return %c0_i32, %c0_i32_0 : i32, i32
  }
  func.func @transform_5(%arg0: i32) -> (i32, i32) {
    %c0_i32 = arith.constant 0 : i32
    %c0_i32_0 = arith.constant 0 : i32
    %c0_i32_1 = arith.constant 0 : i32
    return %c0_i32, %c0_i32_0 : i32, i32
  }
  func.func @transform_6(%arg0: i32) -> (i32, i32) {
    %c0_i32 = arith.constant 0 : i32
    %c0_i32_0 = arith.constant 0 : i32
    %c0_i32_1 = arith.constant 0 : i32
    return %c0_i32, %c0_i32_0 : i32, i32
  }
  func.func @transform_7(%arg0: i32) -> (i32, i32) {
    %c0_i32 = arith.constant 0 : i32
    %c0_i32_0 = arith.constant 0 : i32
    return %arg0, %c0_i32 : i32, i32
  }
}

</mosaic_0001>

<bundles_post_ra>
// kernel: tpu_custom_call.1
= control target key start
LH: loop header
LB: loop body
LE: loop exit
PB: predicated region body
PF: predicated region fallthrough
CT: control target
= control target key end

     0   :  { %12 = vsyncpa [#allocation3], 0  ;;  %s2369_s0 = inlined_call_operand.hbm [shape: f32[2,8,32], index: 0, kind: input, shape index: {}]   ;;  %s2370_s1 = inlined_call_operand.vmem [shape: f32[1,32], index: 1, kind: input, shape index: {}]   ;;  %s2371_s2 = inlined_call_operand.vmem [shape: f32[1,32], index: 2, kind: input, shape index: {}]   ;;  %s2372_s3 = inlined_call_operand.hbm [shape: f32[32,96], index: 3, kind: input, shape index: {}]   ;;  %s2373_s4 = inlined_call_operand.vmem [shape: f32[1,96], index: 4, kind: input, shape index: {}]   ;;  %s2374_s5 = inlined_call_operand.hbm [shape: f32[32,32], index: 5, kind: input, shape index: {}]   ;;  %s2375_s6 = inlined_call_operand.vmem [shape: f32[1,32], index: 6, kind: input, shape index: {}]   ;;  %s2376_s7 = inlined_call_operand.hbm [shape: f32[2,32], index: 7, kind: output, shape index: {}]  }
   0x1   :  { %13 = vsyncpa [#allocation6], 0 }
   0x2   :  { %14 = vsyncpa [#allocation4], 0  ;;  %s2076_s24 = smov [#allocation5]   ;;  %s2077_s26 = smov [#allocation2]  }
   0x3   :  { %s36_s25 = sshll.u32 %s2076_s24, 4  ;;  %s20_s27 = sshll.u32 %s2077_s26, 4  ;;  %s37_s25 = int_to_ptr.vmem [resolvable:$true] %s36_s25  ;;  %s2138_s27 = int_to_ptr.vmem [resolvable:$true] %s20_s27 }
   0x4   :  { %s1982_s30 = scalar_lea.hbm %s2372_s3, 512 }
   0x5   :  { %p1983_p0 = scmp.ne.s32.totalorder %s2372_s3, %s1982_s30  ;;  %p1986_p1 = scmp.lt.u32.totalorder %s1982_s30, %s2372_s3 }
   0x7   :  { %p1988_p2 = pnand %p1986_p1, %p1983_p0 }
   0x9   :  { %1991 = shalt.err (!%p1988_p2)
}
   0xa   :  { %s1992_s12 = scalar_lea.vmem %s37_s25, 512  ;;  %p1997_p4 = scmp.lt.s32.totalorder %s37_s25, %s37_s25 }
   0xb   :  { %p1993_p3 = scmp.ne.s32.totalorder %s37_s25, %s1992_s12  ;;  %p1998_p5 = scmp.lt.s32.totalorder %s1992_s12, %s1992_s12 }
   0xd   :  { %p1999_p6 = por %p1998_p5, %p1997_p4 }
   0xf   :  { %p2000_p7 = pnand %p1999_p6, %p1993_p3 }
  0x11   :  { %2003 = shalt.err (!%p2000_p7)
}
  0x12   :  { %s2078_s13 = smov 128   ;;  %s2079_s14 = smov 8  }
  0x13   :  { %42 = dma.hbm_to_vmem [thread:$0]  %s2372_s3, 512, %s37_s25, [#allocation6], %s2078_s13, %s2078_s13, %s2079_s14  }
  0x14   :  { %s2004_s19 = scalar_lea.hbm %s2369_s0, 256 }
  0x15   :  { %p2005_p8 = scmp.ne.s32.totalorder %s2369_s0, %s2004_s19  ;;  %p2008_p9 = scmp.lt.u32.totalorder %s2004_s19, %s2369_s0 }
  0x17   :  { %p2010_p10 = pnand %p2008_p9, %p2005_p8 }
  0x19   :  { %2013 = shalt.err (!%p2010_p10)
}
  0x1a   :  { %s2014_s24 = scalar_lea.vmem %s2138_s27, 256  ;;  %p2019_p12 = scmp.lt.s32.totalorder %s2138_s27, %s2138_s27 }
  0x1b   :  { %p2015_p11 = scmp.ne.s32.totalorder %s2138_s27, %s2014_s24  ;;  %p2020_p13 = scmp.lt.s32.totalorder %s2014_s24, %s2014_s24 }
  0x1d   :  { %p2021_p0 = por %p2020_p13, %p2019_p12 }
  0x1f   :  { %p2022_p1 = pnand %p2021_p0, %p2015_p11 }
  0x21   :  { %2025 = shalt.err (!%p2022_p1)
}
  0x22   :  { %26 = dma.hbm_to_vmem [thread:$0]  %s2369_s0, 256, %s2138_s27, [#allocation3], %s2078_s13, %s2078_s13, %s2079_s14  }
  0x23   :  { %s2080_s26 = smov [#allocation7]   ;;  %s2026_s8 = scalar_lea.hbm %s2374_s5, 512 }
  0x24   :  { %s50_s28 = sshll.u32 %s2080_s26, 4  ;;  %p2027_p2 = scmp.ne.s32.totalorder %s2374_s5, %s2026_s8  ;;  %s51_s28 = int_to_ptr.vmem [resolvable:$true] %s50_s28 }
  0x25   :  { %p2030_p3 = scmp.lt.u32.totalorder %s2026_s8, %s2374_s5 }
  0x27   :  { %p2032_p4 = pnand %p2030_p3, %p2027_p2 }
  0x29   :  { %2035 = shalt.err (!%p2032_p4)
}
  0x2a   :  { %s2036_s15 = scalar_lea.vmem %s51_s28, 512  ;;  %p2041_p6 = scmp.lt.s32.totalorder %s51_s28, %s51_s28 }
  0x2b   :  { %p2037_p5 = scmp.ne.s32.totalorder %s51_s28, %s2036_s15  ;;  %p2042_p7 = scmp.lt.s32.totalorder %s2036_s15, %s2036_s15 }
  0x2d   :  { %p2043_p8 = por %p2042_p7, %p2041_p6 }
  0x2f   :  { %p2044_p9 = pnand %p2043_p8, %p2037_p5 }
  0x31   :  { %2047 = shalt.err (!%p2044_p9)
}
  0x32   :  { %56 = dma.hbm_to_vmem [thread:$0]  %s2374_s5, 512, %s51_s28, [#allocation6], %s2078_s13, %s2078_s13, %s2079_s14  }
  0x33   :  { %2070 = dma.done.wait [#allocation3], 256  }
  0x34   :  { %2071 = vsyncadd [#allocation3], 4294967040 }
  0x35   :  { %2072 = dma.done.wait [#allocation6], 1024  }
  0x36   :  { %2073 = vsyncadd [#allocation6], 4294966272  ;;  %vm70_vm0 = vcmask 261120   ;;  %v68_v0 = vld [vmem:[#allocation2] sm:$0xff]  ;;  %v69_v1 = vld [vmem:[#allocation2 + $0x8] sm:$0xff]  ;;  %v2081_v36 = vmov 0.0  }
  0x37   :  { %v71_v2 = vsel %vm70_vm0, %v68_v0, 0.0  ;;  %v74_v3 = vsel %vm70_vm0, %v69_v1, 0.0  ;;  %v116_v14 = vld [vmem:[#allocation5] sm:$0xff]  ;;  %v117_v15 = vld [vmem:[#allocation5 + $0x8] sm:$0xff]  ;;  %v118_v16 = vld [vmem:[#allocation5 + $0x10] sm:$0xff]  ;;  %1819 = vmatprep.subr.mxu1 %v2081_v36  ;;  %vm2082_vm1 = vmmov 0  }
  0x38   :  { %72 = vadd.xlane.f32.xlu0 %v71_v2  ;;  %v1910_v17 = vpack.c.bf16 %v117_v15, %v116_v14  ;;  %v119_v18 = vld [vmem:[#allocation5 + $0x18] sm:$0xff]  ;;  %v1734_v27 = vld [vmem:[%s2370_s1] ss:$0 sm:$0xff]  ;;  %1821 = vmatprep.mubr.msk.f32.mxu1 %vm2082_vm1, %v2081_v36  ;;  %s2083_s18 = smov 96   ;;  %vm213_vm2 = vcmask 64512   ;;  %s2085_s19 = smov 88  }
  0x39   :  { %v1914_v19 = vpack.c.bf16 %v119_v18, %v118_v16  ;;  %v1735_v29 = vld [vmem:[%s2371_s2] ss:$0 sm:$0xff]  ;;  %s2086_s20 = smov 120   ;;  %s2087_s21 = smov 56   ;;  %vm1622_vm3 = vcmask 130048   ;;  %vm1625_vm4 = vcmask 195584  }
  0x3a   :  { %1911 = vmatprep.subr.bf16.mxu0 %v1910_v17  ;;  %v1736_v37 = vld [vmem:[%s2373_s4] ss:$0 sm:$0xff]  ;;  %s2084_s4 = smov 64   ;;  %s2088_s22 = smov 80   ;;  %vm1642_vm5 = vcmask 1041409   ;;  %vm1716_vm6 = vcmask 254976  }
  0x3b   :  { %1913 = vmatpush3.bf16.msra.mxu0 %v1910_v17  ;;  %s2089_s23 = smov 112   ;;  %s2090_s24 = smov 48  }
  0x3c   :  { %75 = vadd.xlane.f32.xlu0 %v74_v3  ;;  %1915 = vmatprep.subr.bf16.mxu0 %v1914_v19  ;;  %s2091_s3 = smov 72   ;;  %s2092_s25 = smov 104  }
  0x3d   :  { %s2093_s26 = smov 40   ;;  %s2094_s28 = smov 16  }
  0x3e   :  { %s2097_s8 = smov [#allocation8]  }
  0x3f   :  { %1917 = vmatpush3.bf16.msra.mxu0 %v1914_v19  ;;  %s1724_s9 = sshll.u32 %s2097_s8, 4  ;;  %s1725_s9 = int_to_ptr.vmem [resolvable:$true] %s1724_s9 }
  0x40   :  { %1839 = vmatprep.subr.mxu0 %v2081_v36  ;;  %s2048_s10 = scalar_lea.vmem %s1725_s9, 32  ;;  %p2053_p11 = scmp.lt.s32.totalorder %s1725_s9, %s1725_s9 }
  0x41   :  { %p2049_p10 = scmp.ne.s32.totalorder %s1725_s9, %s2048_s10  ;;  %p2054_p12 = scmp.lt.s32.totalorder %s2048_s10, %s2048_s10 }
  0x43   :  { %p2055_p13 = por %p2054_p12, %p2053_p11 }
  0x45   :  { %p2056_p0 = pnand %p2055_p13, %p2049_p10 }
  0xc5   :  { %v73_v4 = vpop.xlane.xlu0 %72 }
  0xc6   :  { %v78_v5 = vmul.f32 0.03125, %v73_v4 }
  0xc8   :  { %v80_v6 = vsub.f32 %v68_v0, %v78_v5 }
  0xc9   :  { %v76_v7 = vpop.xlane.xlu0 %75 }
  0xca   :  { %v79_v8 = vmul.f32 0.03125, %v76_v7  ;;  %v82_v9 = vmul.f32 %v80_v6, %v80_v6 }
  0xcc   :  { %v81_v10 = vsub.f32 %v69_v1, %v79_v8  ;;  %v84_v11 = vsel %vm70_vm0, %v82_v9, 0.0 }
  0xcd   :  { %85 = vadd.xlane.f32.xlu1 %v84_v11 }
  0xce   :  { %v83_v12 = vmul.f32 %v81_v10, %v81_v10 }
  0xd0   :  { %v87_v13 = vsel %vm70_vm0, %v83_v12, 0.0 }
  0xd1   :  { %88 = vadd.xlane.f32.xlu1 %v87_v13 }
 0x15a   :  { %v86_v20 = vpop.xlane.xlu1 %85 }
 0x15b   :  { %v90_v21 = vmul.f32 0.03125, %v86_v20 }
 0x15d   :  { %v92_v22 = vadd.f32 1e-05, %v90_v21 }
 0x15e   :  { %v89_v23 = vpop.xlane.xlu1 %88 }
 0x15f   :  { %1946 = vrsqrt.f32 %v92_v22  ;;  %v91_v24 = vmul.f32 0.03125, %v89_v23 }
 0x161   :  { %v93_v25 = vadd.f32 1e-05, %v91_v24 }
 0x163   :  { %1948 = vrsqrt.f32 %v93_v25 }
 0x169   :  { %v1947_v26 = vpop.eup %1946 }
 0x16a   :  { %v96_v28 = vmul.f32 %v1947_v26, %v80_v6 }
 0x16c   :  { %v105_v30 = vmul.f32 %v1734_v27, %v96_v28 }
 0x16d   :  { %v1949_v31 = vpop.eup %1948 }
 0x16e   :  { %v97_v32 = vmul.f32 %v1949_v31, %v81_v10  ;;  %v114_v33 = vadd.f32 %v1735_v29, %v105_v30 }
 0x170   :  { %v106_v34 = vmul.f32 %v1734_v27, %v97_v32  ;;  %1816 = vmatprep.mubr.msk.f32.mxu0 %vm70_vm0, %v114_v33 }
 0x172   :  { %v115_v35 = vadd.f32 %v1735_v29, %v106_v34 }
 0x174   :  { %1817 = vmatmul.mubr.msk.f32.vlgmr.msra.gmra.mrb[0].mxu0 %vm70_vm0, %v115_v35 }
 0x175   :  { %1841 = vmatprep.mubr.msk.f32.mxu0 %vm2082_vm1, %v2081_v36 }
 0x247   :  { %v1818_v38 = vpop.f32.mrb[0].mxu0 }
 0x248   :  { %v2211_v39 = vadd.f32 %v1818_v38, %v1736_v37  ;;  %v199_v40 = vpop.f32.mrb[1].mxu0 }
 0x249   :  { %v2213_v41 = vadd.f32 %v1736_v37, %v199_v40 }
 0x24a   :  { %290 = vrot.lane.b32.xlu1 %v2211_v39, %s2083_s18  ;;  %v2228_v45 = vmul.f32 0.35355338, %v2211_v39 }
 0x24b   :  { %211 = vrot.lane.b32.xlu0 %v2213_v41, %s2083_s18  ;;  %v2219_v43 = vmul.f32 0.35355338, %v2213_v41 }
 0x2bc   :  { %v291_v44 = vpop.permute.xlu1 %290 }
 0x2bd   :  { %v212_v42 = vpop.permute.xlu0 %211 }
 0x2be   :  { %1820 = vmatpush3.xpose.msk.msra.mxu1 %vm213_vm2, %v212_v42 }
 0x2bf   :  { %1824 = vmatprep.subr.mxu1 %v2081_v36 }
 0x2c1   :  { %1822 = vmatmul.mubr.msk.f32.vlgmr.msra.gmra.mrb[0].mxu1 %vm213_vm2, %v2219_v43 }
 0x2c2   :  { %1825 = vmatpush3.xpose.msk.msra.mxu1 %vm213_vm2, %v291_v44  ;;  %1826 = vmatprep.mubr.msk.f32.mxu1 %vm2082_vm1, %v2081_v36 }
 0x2c3   :  { %1829 = vmatprep.subr.mxu1 %v2081_v36 }
 0x2c5   :  { %1827 = vmatmul.mubr.msk.f32.vlgmr.msra.gmra.mrb[2].mxu1 %vm213_vm2, %v2228_v45 }
 0x2c6   :  { %1831 = vmatprep.mubr.msk.f32.mxu1 %vm2082_vm1, %v2081_v36 }
 0x394   :  { %v285_v46 = vpop.f32.mrb[0].mxu1 }
 0x395   :  { %v1823_v47 = vpop.f32.mrb[1].mxu1  ;;  %v367_v48 = vsel %vm213_vm2, %v285_v46, -inf }
 0x396   :  { %368 = vmax.xlane.f32.xlu1 %v367_v48 }
 0x398   :  { %v363_v49 = vpop.f32.mrb[2].mxu1 }
 0x399   :  { %v1828_v50 = vpop.f32.mrb[3].mxu1  ;;  %v370_v51 = vsel %vm213_vm2, %v363_v49, -inf }
 0x39a   :  { %371 = vmax.xlane.f32.xlu0 %v370_v51 }
 0x423   :  { %v369_v52 = vpop.xlane.xlu1 %368 }
 0x424   :  { %v373_v53 = vsub.f32 %v285_v46, %v369_v52 }
 0x426   :  { %v375_v54 = vmul.f32 1.442695, %v373_v53 }
 0x427   :  { %v372_v55 = vpop.xlane.xlu0 %371 }
 0x428   :  { %1950 = vpow2.f32 %v375_v54  ;;  %v374_v56 = vsub.f32 %v363_v49, %v372_v55 }
 0x42a   :  { %v377_v57 = vmul.f32 1.442695, %v374_v56 }
 0x42c   :  { %1952 = vpow2.f32 %v377_v57 }
 0x432   :  { %v1951_v58 = vpop.eup %1950 }
 0x433   :  { %v379_v59 = vsel %vm213_vm2, %v1951_v58, 0.0 }
 0x434   :  { %380 = vadd.xlane.f32.xlu0 %v379_v59 }
 0x436   :  { %v1953_v60 = vpop.eup %1952 }
 0x437   :  { %v382_v61 = vsel %vm213_vm2, %v1953_v60, 0.0 }
 0x438   :  { %383 = vadd.xlane.f32.xlu1 %v382_v61 }
 0x449   :  { %482 = vrot.lane.b32.xlu1 %v2211_v39, %s2084_s4 }
 0x44a   :  { %406 = vrot.lane.b32.xlu0 %v2213_v41, %s2084_s4 }
 0x44d   :  { %638 = vrot.lane.b32.xlu1 %v2211_v39, %s2085_s19 }
 0x44e   :  { %636 = vrot.lane.b32.xlu0 %v2228_v45, %s2086_s20 }
 0x451   :  { %560 = vrot.lane.b32.xlu1 %v2213_v41, %s2085_s19 }
 0x455   :  { %558 = vrot.lane.b32.xlu1 %v2219_v43, %s2086_s20 }
 0x4c1   :  { %v381_v62 = vpop.xlane.xlu0 %380 }
 0x4c2   :  { %1954 = vrcp.f32 %v381_v62 }
 0x4c5   :  { %v384_v63 = vpop.xlane.xlu1 %383  ;;  %v407_v0 = vpop.permute.xlu0 %406 }
 0x4c6   :  { %1956 = vrcp.f32 %v384_v63  ;;  %1830 = vmatpush3.msra.mxu1 %v407_v0 }
 0x4c7   :  { %1834 = vmatprep.subr.mxu1 %v2081_v36 }
 0x4c9   :  { %v483_v1 = vpop.permute.xlu1 %482  ;;  %v637_v25 = vpop.permute.xlu0 %636 }
 0x4cc   :  { %v1955_v2 = vpop.eup %1954 }
 0x4cd   :  { %v387_v3 = vmul.f32 %v1955_v2, %v1951_v58  ;;  %v639_v4 = vpop.permute.xlu1 %638 }
 0x4cf   :  { %v389_v5 = vsel %vm213_vm2, %v387_v3, 0.0 }
 0x4d0   :  { %v1957_v6 = vpop.eup %1956  ;;  %v390_v7 = vrot.slane %v389_v5, 4 }
 0x4d1   :  { %v388_v8 = vmul.f32 %v1957_v6, %v1953_v60  ;;  %v561_v9 = vpop.permute.xlu1 %560 }
 0x4d2   :  { %v391_v10 = vadd.f32 %v390_v7, %v389_v5  ;;  %1840 = vmatpush3.xpose.msk.msra.mxu0 %vm213_vm2, %v561_v9 }
 0x4d3   :  { %v396_v11 = vsel %vm213_vm2, %v388_v8, 0.0  ;;  %1849 = vmatprep.subr.mxu0 %v2081_v36 }
 0x4d4   :  { %v397_v12 = vrot.slane %v396_v11, 4  ;;  %v392_v13 = vrot.slane %v391_v10, 2 }
 0x4d5   :  { %v559_v14 = vpop.permute.xlu1 %558 }
 0x4d6   :  { %v398_v15 = vadd.f32 %v397_v12, %v396_v11  ;;  %1842 = vmatmul.mubr.msk.f32.vlgmr.msra.gmra.mrb[2].mxu0 %vm213_vm2, %v559_v14  ;;  %v393_v16 = vadd.f32 %v392_v13, %v391_v10 }
 0x4d7   :  { %1851 = vmatprep.mubr.msk.f32.mxu0 %vm2082_vm1, %v2081_v36 }
 0x4d8   :  { %v394_v17 = vrot.slane %v393_v16, 1  ;;  %v399_v18 = vrot.slane %v398_v15, 2 }
 0x4da   :  { %v395_v19 = vadd.f32 %v394_v17, %v393_v16  ;;  %v400_v20 = vadd.f32 %v399_v18, %v398_v15 }
 0x4dc   :  { %v404_v21 = vmul.f32 0.125, %v395_v19  ;;  %v401_v22 = vrot.slane %v400_v20, 1 }
 0x4de   :  { %1832 = vmatmul.mubr.msk.f32.vlgmr.msra.gmra.mrb[4].mxu1 %vm213_vm2, %v404_v21  ;;  %v402_v23 = vadd.f32 %v401_v22, %v400_v20 }
 0x4df   :  { %1835 = vmatpush3.msra.mxu1 %v483_v1  ;;  %1836 = vmatprep.mubr.msk.f32.mxu1 %vm2082_vm1, %v2081_v36 }
 0x4e0   :  { %v405_v24 = vmul.f32 0.125, %v402_v23  ;;  %1844 = vmatprep.subr.mxu1 %v2081_v36 }
 0x4e2   :  { %1837 = vmatmul.mubr.msk.f32.vlgmr.msra.gmra.mrb[6].mxu1 %vm213_vm2, %v405_v24 }
 0x4e3   :  { %1846 = vmatprep.mubr.msk.f32.mxu1 %vm2082_vm1, %v2081_v36 }
 0x4e6   :  { %1845 = vmatpush3.xpose.msk.msra.mxu1 %vm213_vm2, %v639_v4 }
 0x4e7   :  { %1854 = vmatprep.subr.mxu1 %v2081_v36 }
 0x4e9   :  { %1847 = vmatmul.mubr.msk.f32.vlgmr.msra.gmra.mrb[8].mxu1 %vm213_vm2, %v637_v25 }
 0x4ea   :  { %1856 = vmatprep.mubr.msk.f32.mxu1 %vm2082_vm1, %v2081_v36 }
 0x5a9   :  { %v632_v26 = vpop.f32.mrb[2].mxu0 }
 0x5aa   :  { %v1843_v27 = vpop.f32.mrb[3].mxu0  ;;  %v714_v28 = vsel %vm213_vm2, %v632_v26, -inf }
 0x5ab   :  { %715 = vmax.xlane.f32.xlu1 %v714_v28 }
 0x5b1   :  { %v2266_v29 = vpop.f32.mrb[4].mxu1 }
 0x5b2   :  { %v1833_v30 = vpop.f32.mrb[5].mxu1 }
 0x5b5   :  { %v2268_v31 = vpop.f32.mrb[6].mxu1 }
 0x5b6   :  { %v1838_v32 = vpop.f32.mrb[7].mxu1 }
 0x5bc   :  { %v710_v33 = vpop.f32.mrb[8].mxu1  ;;  %752 = vrot.lane.b32.xlu1 %v2213_v41, %s2087_s21 }
 0x5bd   :  { %v1848_v34 = vpop.f32.mrb[9].mxu1  ;;  %v717_v35 = vsel %vm213_vm2, %v710_v33, -inf }
 0x5be   :  { %718 = vmax.xlane.f32.xlu0 %v717_v35 }
 0x5c0   :  { %984 = vrot.lane.b32.xlu1 %v2211_v39, %s2088_s22 }
 0x5c4   :  { %906 = vrot.lane.b32.xlu1 %v2213_v41, %s2088_s22 }
 0x5c8   :  { %904 = vrot.lane.b32.xlu1 %v2219_v43, %s2089_s23 }
 0x638   :  { %v716_v37 = vpop.xlane.xlu1 %715 }
 0x639   :  { %v720_v40 = vsub.f32 %v632_v26, %v716_v37 }
 0x63b   :  { %v722_v46 = vmul.f32 1.442695, %v720_v40 }
 0x63c   :  { %v753_v38 = vpop.permute.xlu1 %752 }
 0x63d   :  { %1850 = vmatpush3.msra.mxu0 %v753_v38 }
 0x63e   :  { %1859 = vmatprep.subr.mxu0 %v2081_v36 }
 0x640   :  { %v985_v5 = vpop.permute.xlu1 %984 }
 0x644   :  { %v907_v11 = vpop.permute.xlu1 %906 }
 0x648   :  { %v905_v14 = vpop.permute.xlu1 %904 }
 0x64b   :  { %v719_v42 = vpop.xlane.xlu0 %718 }
 0x64c   :  { %v721_v44 = vsub.f32 %v710_v33, %v719_v42 }
 0x64e   :  { %v724_v47 = vmul.f32 1.442695, %v721_v44 }
 0x650   :  { %1958 = vpow2.f32 %v724_v47 }
 0x651   :  { %1960 = vpow2.f32 %v722_v46 }
 0x65a   :  { %v1959_v48 = vpop.eup %1958 }
 0x65b   :  { %v729_v49 = vsel %vm213_vm2, %v1959_v48, 0.0  ;;  %v1961_v50 = vpop.eup %1960 }
 0x65c   :  { %730 = vadd.xlane.f32.xlu0 %v729_v49  ;;  %v726_v51 = vsel %vm213_vm2, %v1961_v50, 0.0 }
 0x660   :  { %727 = vadd.xlane.f32.xlu0 %v726_v51 }
 0x676   :  { %828 = vrot.lane.b32.xlu0 %v2211_v39, %s2087_s21 }
 0x67a   :  { %982 = vrot.lane.b32.xlu0 %v2228_v45, %s2089_s23 }
 0x6e9   :  { %v731_v52 = vpop.xlane.xlu0 %730 }
 0x6ea   :  { %1962 = vrcp.f32 %v731_v52 }
 0x6ed   :  { %v728_v53 = vpop.xlane.xlu0 %727 }
 0x6ee   :  { %1964 = vrcp.f32 %v728_v53 }
 0x6f1   :  { %v829_v54 = vpop.permute.xlu0 %828 }
 0x6f2   :  { %1855 = vmatpush3.msra.mxu1 %v829_v54 }
 0x6f3   :  { %1864 = vmatprep.subr.mxu1 %v2081_v36 }
 0x6f4   :  { %v1963_v55 = vpop.eup %1962 }
 0x6f5   :  { %v735_v56 = vmul.f32 %v1963_v55, %v1959_v48  ;;  %v983_v13 = vpop.permute.xlu0 %982 }
 0x6f7   :  { %v743_v57 = vsel %vm213_vm2, %v735_v56, 0.0 }
 0x6f8   :  { %v1965_v58 = vpop.eup %1964  ;;  %v744_v59 = vrot.slane %v743_v57, 4 }
 0x6f9   :  { %v734_v60 = vmul.f32 %v1965_v58, %v1961_v50 }
 0x6fa   :  { %v745_v61 = vadd.f32 %v744_v59, %v743_v57 }
 0x6fb   :  { %v736_v62 = vsel %vm213_vm2, %v734_v60, 0.0 }
 0x6fc   :  { %v737_v63 = vrot.slane %v736_v62, 4  ;;  %v746_v0 = vrot.slane %v745_v61, 2 }
 0x6fe   :  { %v738_v1 = vadd.f32 %v737_v63, %v736_v62  ;;  %v747_v2 = vadd.f32 %v746_v0, %v745_v61 }
 0x700   :  { %v748_v3 = vrot.slane %v747_v2, 1  ;;  %v739_v4 = vrot.slane %v738_v1, 2 }
 0x702   :  { %v749_v6 = vadd.f32 %v748_v3, %v747_v2  ;;  %v740_v7 = vadd.f32 %v739_v4, %v738_v1 }
 0x704   :  { %v751_v8 = vmul.f32 0.125, %v749_v6  ;;  %v741_v9 = vrot.slane %v740_v7, 1 }
 0x706   :  { %1857 = vmatmul.mubr.msk.f32.vlgmr.msra.gmra.mrb[10].mxu1 %vm213_vm2, %v751_v8  ;;  %v742_v10 = vadd.f32 %v741_v9, %v740_v7 }
 0x707   :  { %1865 = vmatpush3.xpose.msk.msra.mxu1 %vm213_vm2, %v985_v5  ;;  %1866 = vmatprep.mubr.msk.f32.mxu1 %vm2082_vm1, %v2081_v36 }
 0x708   :  { %v750_v12 = vmul.f32 0.125, %v742_v10  ;;  %1874 = vmatprep.subr.mxu1 %v2081_v36 }
 0x70a   :  { %1852 = vmatmul.mubr.msk.f32.vlgmr.msra.gmra.mrb[4].mxu0 %vm213_vm2, %v750_v12  ;;  %1867 = vmatmul.mubr.msk.f32.vlgmr.msra.gmra.mrb[12].mxu1 %vm213_vm2, %v983_v13 }
 0x70b   :  { %1860 = vmatpush3.xpose.msk.msra.mxu0 %vm213_vm2, %v907_v11  ;;  %1861 = vmatprep.mubr.msk.f32.mxu0 %vm2082_vm1, %v2081_v36 }
 0x70c   :  { %1869 = vmatprep.subr.mxu0 %v2081_v36  ;;  %1876 = vmatprep.mubr.msk.f32.mxu1 %vm2082_vm1, %v2081_v36 }
 0x70e   :  { %1862 = vmatmul.mubr.msk.f32.vlgmr.msra.gmra.mrb[6].mxu0 %vm213_vm2, %v905_v14 }
 0x70f   :  { %1871 = vmatprep.mubr.msk.f32.mxu0 %vm2082_vm1, %v2081_v36 }
 0x7d9   :  { %v2299_v15 = vpop.f32.mrb[10].mxu1 }
 0x7da   :  { %v1858_v16 = vpop.f32.mrb[11].mxu1 }
 0x7dd   :  { %v2301_v17 = vpop.f32.mrb[4].mxu0  ;;  %v1056_v18 = vpop.f32.mrb[12].mxu1 }
 0x7de   :  { %v1853_v19 = vpop.f32.mrb[5].mxu0  ;;  %v1868_v20 = vpop.f32.mrb[13].mxu1  ;;  %v1063_v21 = vsel %vm213_vm2, %v1056_v18, -inf }
 0x7df   :  { %1064 = vmax.xlane.f32.xlu0 %v1063_v21 }
 0x7e1   :  { %v978_v22 = vpop.f32.mrb[6].mxu0 }
 0x7e2   :  { %v1863_v23 = vpop.f32.mrb[7].mxu0  ;;  %v1060_v24 = vsel %vm213_vm2, %v978_v22, -inf }
 0x7e3   :  { %1061 = vmax.xlane.f32.xlu1 %v1060_v24 }
 0x7f4   :  { %1098 = vrot.lane.b32.xlu1 %v2213_v41, %s2090_s24 }
 0x7f8   :  { %1330 = vrot.lane.b32.xlu1 %v2211_v39, %s2091_s3 }
 0x7fc   :  { %1252 = vrot.lane.b32.xlu1 %v2213_v41, %s2091_s3 }
 0x800   :  { %1250 = vrot.lane.b32.xlu1 %v2219_v43, %s2092_s25 }
 0x86c   :  { %v1065_v25 = vpop.xlane.xlu0 %1064 }
 0x86d   :  { %v1067_v26 = vsub.f32 %v1056_v18, %v1065_v25 }
 0x86f   :  { %v1070_v27 = vmul.f32 1.442695, %v1067_v26 }
 0x870   :  { %v1062_v28 = vpop.xlane.xlu1 %1061 }
 0x871   :  { %1966 = vpow2.f32 %v1070_v27  ;;  %v1066_v30 = vsub.f32 %v978_v22, %v1062_v28 }
 0x873   :  { %v1068_v32 = vmul.f32 1.442695, %v1066_v30 }
 0x874   :  { %v1099_v33 = vpop.permute.xlu1 %1098 }
 0x875   :  { %1968 = vpow2.f32 %v1068_v32  ;;  %1870 = vmatpush3.msra.mxu0 %v1099_v33 }
 0x876   :  { %1879 = vmatprep.subr.mxu0 %v2081_v36 }
 0x878   :  { %v1331_v58 = vpop.permute.xlu1 %1330 }
 0x87b   :  { %v1967_v34 = vpop.eup %1966 }
 0x87c   :  { %v1075_v35 = vsel %vm213_vm2, %v1967_v34, 0.0  ;;  %v1253_v0 = vpop.permute.xlu1 %1252 }
 0x87d   :  { %1076 = vadd.xlane.f32.xlu0 %v1075_v35 }
 0x87f   :  { %v1969_v37 = vpop.eup %1968 }
 0x880   :  { %v1072_v38 = vsel %vm213_vm2, %v1969_v37, 0.0  ;;  %v1251_v3 = vpop.permute.xlu1 %1250 }
 0x881   :  { %1073 = vadd.xlane.f32.xlu0 %v1072_v38 }
 0x897   :  { %1174 = vrot.lane.b32.xlu0 %v2211_v39, %s2090_s24 }
 0x89b   :  { %1328 = vrot.lane.b32.xlu0 %v2228_v45, %s2092_s25 }
 0x90a   :  { %v1077_v43 = vpop.xlane.xlu0 %1076 }
 0x90b   :  { %1970 = vrcp.f32 %v1077_v43 }
 0x90e   :  { %v1074_v40 = vpop.xlane.xlu0 %1073 }
 0x90f   :  { %1972 = vrcp.f32 %v1074_v40 }
 0x912   :  { %v1175_v42 = vpop.permute.xlu0 %1174 }
 0x913   :  { %1875 = vmatpush3.msra.mxu1 %v1175_v42 }
 0x914   :  { %1884 = vmatprep.subr.mxu1 %v2081_v36 }
 0x915   :  { %v1971_v44 = vpop.eup %1970 }
 0x916   :  { %v1081_v46 = vmul.f32 %v1971_v44, %v1967_v34  ;;  %v1329_v2 = vpop.permute.xlu0 %1328 }
 0x918   :  { %v1089_v47 = vsel %vm213_vm2, %v1081_v46, 0.0 }
 0x919   :  { %v1973_v48 = vpop.eup %1972  ;;  %v1090_v49 = vrot.slane %v1089_v47, 4 }
 0x91a   :  { %v1080_v50 = vmul.f32 %v1973_v48, %v1969_v37 }
 0x91b   :  { %v1091_v51 = vadd.f32 %v1090_v49, %v1089_v47 }
 0x91c   :  { %v1082_v52 = vsel %vm213_vm2, %v1080_v50, 0.0 }
 0x91d   :  { %v1083_v53 = vrot.slane %v1082_v52, 4  ;;  %v1092_v45 = vrot.slane %v1091_v51, 2 }
 0x91f   :  { %v1084_v54 = vadd.f32 %v1083_v53, %v1082_v52  ;;  %v1093_v55 = vadd.f32 %v1092_v45, %v1091_v51  ;;  %v1628_v52 = vld [vmem:[#allocation7] sm:$0xff]  ;;  %v1629_v53 = vld [vmem:[#allocation7 + $0x8] sm:$0xff]  ;;  %v2095_v45 = vmov 0.0|0.0  }
 0x921   :  { %v1094_v56 = vrot.slane %v1093_v55, 1  ;;  %v1085_v57 = vrot.slane %v1084_v54, 2 }
 0x923   :  { %v1095_v59 = vadd.f32 %v1094_v56, %v1093_v55  ;;  %v1086_v60 = vadd.f32 %v1085_v57, %v1084_v54  ;;  %v1919_v54 = vpack.c.bf16 %v1629_v53, %v1628_v52  ;;  %v1630_v55 = vld [vmem:[#allocation7 + $0x10] sm:$0xff]  ;;  %v1631_v56 = vld [vmem:[#allocation7 + $0x18] sm:$0xff] }
 0x924   :  { %v1922_v57 = vpack.c.bf16 %v1631_v56, %v1630_v55 }
 0x925   :  { %v1097_v61 = vmul.f32 0.125, %v1095_v59  ;;  %v1087_v62 = vrot.slane %v1086_v60, 1 }
 0x927   :  { %1877 = vmatmul.mubr.msk.f32.vlgmr.msra.gmra.mrb[14].mxu1 %vm213_vm2, %v1097_v61  ;;  %v1088_v63 = vadd.f32 %v1087_v62, %v1086_v60 }
 0x928   :  { %1885 = vmatpush3.xpose.msk.msra.mxu1 %vm213_vm2, %v1331_v58  ;;  %1886 = vmatprep.mubr.msk.f32.mxu1 %vm2082_vm1, %v2081_v36 }
 0x929   :  { %v1096_v1 = vmul.f32 0.125, %v1088_v63  ;;  %1894 = vmatprep.subr.mxu1 %v2081_v36 }
 0x92b   :  { %1872 = vmatmul.mubr.msk.f32.vlgmr.msra.gmra.mrb[8].mxu0 %vm213_vm2, %v1096_v1  ;;  %1887 = vmatmul.mubr.msk.f32.vlgmr.msra.gmra.mrb[16].mxu1 %vm213_vm2, %v1329_v2 }
 0x92c   :  { %1880 = vmatpush3.xpose.msk.msra.mxu0 %vm213_vm2, %v1253_v0  ;;  %1881 = vmatprep.mubr.msk.f32.mxu0 %vm2082_vm1, %v2081_v36 }
 0x92d   :  { %1889 = vmatprep.subr.mxu0 %v2081_v36  ;;  %1896 = vmatprep.mubr.msk.f32.mxu1 %vm2082_vm1, %v2081_v36 }
 0x92f   :  { %1882 = vmatmul.mubr.msk.f32.vlgmr.msra.gmra.mrb[10].mxu0 %vm213_vm2, %v1251_v3 }
 0x930   :  { %1891 = vmatprep.mubr.msk.f32.mxu0 %vm2082_vm1, %v2081_v36 }
 0x9fa   :  { %v1246_v4 = vpop.f32.mrb[14].mxu1 }
 0x9fb   :  { %v1878_v5 = vpop.f32.mrb[15].mxu1 }
 0x9fe   :  { %v1170_v6 = vpop.f32.mrb[8].mxu0  ;;  %v1402_v7 = vpop.f32.mrb[16].mxu1 }
 0x9ff   :  { %v1873_v8 = vpop.f32.mrb[9].mxu0  ;;  %v1888_v9 = vpop.f32.mrb[17].mxu1  ;;  %v1409_v10 = vsel %vm213_vm2, %v1402_v7, -inf }
 0xa00   :  { %1410 = vmax.xlane.f32.xlu0 %v1409_v10 }
 0xa02   :  { %v1324_v11 = vpop.f32.mrb[10].mxu0 }
 0xa03   :  { %v1883_v12 = vpop.f32.mrb[11].mxu0  ;;  %v1406_v13 = vsel %vm213_vm2, %v1324_v11, -inf }
 0xa04   :  { %1407 = vmax.xlane.f32.xlu1 %v1406_v13 }
 0xa15   :  { %1444 = vrot.lane.b32.xlu1 %v2213_v41, %s2093_s26 }
 0xa19   :  { %1600 = vrot.lane.b32.xlu1 %v2299_v15, %s2079_s14 }
 0xa1d   :  { %1608 = vrot.lane.b32.xlu1 %v1246_v4, %s2094_s28 }
 0xa8d   :  { %v1411_v14 = vpop.xlane.xlu0 %1410 }
 0xa8e   :  { %v1413_v16 = vsub.f32 %v1402_v7, %v1411_v14 }
 0xa90   :  { %v1416_v18 = vmul.f32 1.442695, %v1413_v16 }
 0xa91   :  { %v1408_v19 = vpop.xlane.xlu1 %1407 }
 0xa92   :  { %1974 = vpow2.f32 %v1416_v18  ;;  %v1412_v20 = vsub.f32 %v1324_v11, %v1408_v19  ;;  %v1763_v11 = vld [vmem:[%s2375_s6] ss:$0 sm:$0xff] }
 0xa94   :  { %v1414_v21 = vmul.f32 1.442695, %v1412_v20 }
 0xa95   :  { %v1445_v22 = vpop.permute.xlu1 %1444 }
 0xa96   :  { %1976 = vpow2.f32 %v1414_v21  ;;  %1890 = vmatpush3.msra.mxu0 %v1445_v22 }
 0xa97   :  { %1918 = vmatprep.subr.bf16.mxu0 %v2095_v45 }
 0xa99   :  { %v1601_v62 = vpop.permute.xlu1 %1600 }
 0xa9a   :  { %v1621_v0 = vsel %vm213_vm2, %v2268_v31, %v1601_v62 }
 0xa9c   :  { %v1975_v23 = vpop.eup %1974 }
 0xa9d   :  { %v1421_v24 = vsel %vm213_vm2, %v1975_v23, 0.0  ;;  %v1609_v63 = vpop.permute.xlu1 %1608 }
 0xa9e   :  { %1422 = vadd.xlane.f32.xlu0 %v1421_v24  ;;  %v1624_v1 = vsel %vm1622_vm3, %v1621_v0, %v1609_v63 }
 0xaa0   :  { %v1977_v41 = vpop.eup %1976 }
 0xaa1   :  { %v1418_v25 = vsel %vm213_vm2, %v1977_v41, 0.0 }
 0xaa2   :  { %1419 = vadd.xlane.f32.xlu0 %v1418_v25 }
 0xab8   :  { %1520 = vrot.lane.b32.xlu0 %v2211_v39, %s2093_s26 }
 0xabc   :  { %1598 = vrot.lane.b32.xlu0 %v2301_v17, %s2079_s14  ;;  %s2096_s14 = smov 24  }
 0xac0   :  { %1606 = vrot.lane.b32.xlu0 %v1170_v6, %s2094_s28 }
 0xb2b   :  { %v1423_v15 = vpop.xlane.xlu0 %1422 }
 0xb2c   :  { %1978 = vrcp.f32 %v1423_v15 }
 0xb2f   :  { %v1420_v26 = vpop.xlane.xlu0 %1419 }
 0xb30   :  { %1980 = vrcp.f32 %v1420_v26 }
 0xb33   :  { %v1521_v27 = vpop.permute.xlu0 %1520 }
 0xb34   :  { %1895 = vmatpush3.msra.mxu1 %v1521_v27 }
 0xb36   :  { %v1979_v28 = vpop.eup %1978 }
 0xb37   :  { %v1427_v30 = vmul.f32 %v1979_v28, %v1975_v23 }
 0xb39   :  { %v1435_v32 = vsel %vm213_vm2, %v1427_v30, 0.0 }
 0xb3a   :  { %v1981_v33 = vpop.eup %1980  ;;  %v1436_v34 = vrot.slane %v1435_v32, 4 }
 0xb3b   :  { %v1426_v35 = vmul.f32 %v1981_v33, %v1977_v41 }
 0xb3c   :  { %v1437_v37 = vadd.f32 %v1436_v34, %v1435_v32 }
 0xb3d   :  { %v1428_v39 = vsel %vm213_vm2, %v1426_v35, 0.0 }
 0xb3e   :  { %v1429_v38 = vrot.slane %v1428_v39, 4  ;;  %v1438_v43 = vrot.slane %v1437_v37, 2 }
 0xb40   :  { %v1430_v17 = vadd.f32 %v1429_v38, %v1428_v39  ;;  %v1439_v40 = vadd.f32 %v1438_v43, %v1437_v37 }
 0xb42   :  { %v1440_v42 = vrot.slane %v1439_v40, 1  ;;  %v1431_v44 = vrot.slane %v1430_v17, 2 }
 0xb44   :  { %v1441_v46 = vadd.f32 %v1440_v42, %v1439_v40  ;;  %v1432_v47 = vadd.f32 %v1431_v44, %v1430_v17 }
 0xb46   :  { %v1443_v48 = vmul.f32 0.125, %v1441_v46  ;;  %v1433_v49 = vrot.slane %v1432_v47, 1 }
 0xb48   :  { %1897 = vmatmul.mubr.msk.f32.vlgmr.msra.gmra.mrb[18].mxu1 %vm213_vm2, %v1443_v48  ;;  %v1434_v50 = vadd.f32 %v1433_v49, %v1432_v47 }
 0xb4a   :  { %v1442_v51 = vmul.f32 0.125, %v1434_v50 }
 0xb4c   :  { %1892 = vmatmul.mubr.msk.f32.vlgmr.msra.gmra.mrb[12].mxu0 %vm213_vm2, %v1442_v51 }
 0xb4d   :  { %1907 = vmatprep.mubr.msk.f32.mxu0 %vm2082_vm1, %v2081_v36  ;;  %1920 = vmatpush3.bf16.msra.mxu0 %v1919_v54  ;;  %v1599_v36 = vpop.permute.xlu0 %1598 }
 0xb4e   :  { %1921 = vmatprep.subr.bf16.mxu0 %v2095_v45  ;;  %v1620_v5 = vsel %vm213_vm2, %v2266_v29, %v1599_v36 }
 0xb51   :  { %1923 = vmatpush3.bf16.msra.mxu0 %v1922_v57  ;;  %v1607_v3 = vpop.permute.xlu0 %1606 }
 0xb52   :  { %v1623_v6 = vsel %vm1622_vm3, %v1620_v5, %v1607_v3 }
 0xc1b   :  { %v1592_v58 = vpop.f32.mrb[18].mxu1 }
 0xc1c   :  { %1616 = vrot.lane.b32.xlu1 %v1592_v58, %s2096_s14  ;;  %v1898_v59 = vpop.f32.mrb[19].mxu1 }
 0xc1f   :  { %v1516_v60 = vpop.f32.mrb[12].mxu0 }
 0xc20   :  { %v1893_v61 = vpop.f32.mrb[13].mxu0  ;;  %1614 = vrot.lane.b32.xlu1 %v1516_v60, %s2096_s14 }
 0xc8e   :  { %v1617_v2 = vpop.permute.xlu1 %1616 }
 0xc8f   :  { %v1627_v4 = vsel %vm1625_vm4, %v1624_v1, %v1617_v2 }
 0xc90   :  { %v1641_v7 = vrot.slane %v1627_v4, 7 }
 0xc92   :  { %v1615_v8 = vpop.permute.xlu1 %1614 }
 0xc93   :  { %v1626_v9 = vsel %vm1625_vm4, %v1623_v6, %v1615_v8 }
 0xc94   :  { %v1643_v10 = vsel %vm1642_vm5, %v1641_v7, %v1626_v9 }
 0xc95   :  { %1908 = vmatmul.mubr.msk.f32.vlgmr.msra.gmra.mrb[14].mxu0 %vm70_vm0, %v1643_v10 }
 0xd68   :  { %v1712_v31 = vpop.f32.mrb[14].mxu0 }
 0xd69   :  { %v1713_v12 = vadd.f32 %v1763_v11, %v1712_v31  ;;  %v1909_v13 = vpop.f32.mrb[15].mxu0 }
 0xd6b   :  { %1717 = vst.msk [vmem:[#allocation8] sm:$0x3] %vm1716_vm6, %v1713_v12 }
 0xd6c   :  { %2059 = shalt.err (!%p2056_p0)
}
 0xd6d   :  { %s2060_s15 = scalar_lea.hbm %s2376_s7, 32 }
 0xd6e   :  { %p2061_p1 = scmp.ne.s32.totalorder %s2376_s7, %s2060_s15  ;;  %p2064_p2 = scmp.lt.u32.totalorder %s2060_s15, %s2376_s7 }
 0xd70   :  { %p2066_p3 = pnand %p2064_p2, %p2061_p1 }
 0xd72   :  { %2069 = shalt.err (!%p2066_p3)
}
 0xd73   :  { %1727 = dma.vmem_to_hbm [thread:$0]  %s1725_s9, 32, %s2376_s7, [#allocation4]  }
 0xd74   :  { %2074 = dma.done.wait [#allocation4], 32  }
 0xd75   :  { %2075 = vsyncadd [#allocation4], 4294967264 }
 0xd76   :  { %1731 = vsyncpa [#allocation3], 1 }
 0xd77   :  { %1732 = vsyncpa [#allocation6], 1 }
 0xd78   :  { %1733 = vsyncpa [#allocation4], 1 }

</bundles_post_ra>
